<compile_context>
chip_gen: v5e
topology: v5e:2x2
jax: 0.10.0
libtpu: 0.0.40
codegen_flags: <defaults>
</compile_context>

<pallas_src>
import jax
import jax.numpy as jnp
from jax.experimental import pallas as pl
from jax.experimental.pallas import tpu as pltpu


def _round_up(v, m):
    return ((v + m - 1) // m) * m


def resnet_classifier_forward(x_nchw, weight, bias, *, tm=None, thw=None):
    """x_nchw: (N, C, H, W); weight: (num_classes, C); bias: (num_classes,)."""
    n, c, h, w = x_nchw.shape
    hw = h * w
    num_classes = weight.shape[0]
    ncp = _round_up(num_classes, 128)                    # lane-dense class dim

    # Free reshape of contiguous NCHW -> (N, C, H*W); no extra HBM traffic.
    x3 = x_nchw.reshape(n, c, hw)
    x_dtype = x3.dtype
    itemsize = jnp.dtype(x_dtype).itemsize
    out_dtype = x_dtype                                  # mixed-precision convention

    # Weight: fold mean scale, transpose to (C, NCP); bf16 storage for bf16 inputs.
    w_dtype = jnp.bfloat16 if x_dtype == jnp.bfloat16 else jnp.float32
    w_itemsize = jnp.dtype(w_dtype).itemsize
    out_itemsize = jnp.dtype(out_dtype).itemsize
    w_t = weight.astype(jnp.float32).T * (1.0 / float(hw))          # (C, num_classes)
    w_p = jnp.zeros((c, ncp), w_dtype).at[:, :num_classes].set(w_t.astype(w_dtype))
    b_p = jnp.zeros((1, ncp), jnp.float32).at[0, :num_classes].set(
        bias.astype(jnp.float32))

    # ---- Generation-aware VMEM budgeting ------------------------------------
    try:
        vmem_cap = int(pltpu.get_tpu_info().vmem_capacity_bytes)
    except Exception:
        vmem_cap = 64 * 1024 * 1024                      # conservative (v7x per-TC)
    if vmem_cap >= 96 * 1024 * 1024:                     # 128 MiB parts: v5e / v6e
        tile_budget = 88 * 1024 * 1024
        vmem_cap_limit = 100 * 1024 * 1024
    else:                                                # 64 MiB parts: v7x
        tile_budget = 40 * 1024 * 1024
        vmem_cap_limit = 46 * 1024 * 1024

    # Layout padding: lanes (last dim) -> mult of 128, sublanes (2nd-last) per dtype.
    sub_x = max(8, 32 // itemsize)                       # 8 f32 / 16 bf16 / 32 i8
    sub_w = max(8, 32 // w_itemsize)
    c_sub = _round_up(c, sub_x)
    resident = (2 * _round_up(c, sub_w) * ncp * w_itemsize   # weight (maybe 2-buf)
                + 2 * 8 * ncp * 4)                           # bias
    avail = max(1 << 20, tile_budget - resident)

    # Spatial chunking only if even an 8-row full-spatial x tile doesn't fit.
    if thw is None:
        if 2 * 8 * c_sub * _round_up(hw, 128) * itemsize <= avail:
            thw = hw
        else:
            thw = (avail // (2 * 8 * c_sub * itemsize) // 128) * 128
            thw = int(max(128, min(thw, _round_up(hw, 128))))
            if thw >= hw:
                thw = hw
    nk = pl.cdiv(hw, thw)
    needs_mask = (hw % thw) != 0                         # partial last spatial chunk

    # Batch tile sizing from the remaining budget (layout-padded bytes per row).
    per_row = (2 * c_sub * _round_up(thw, 128) * itemsize    # x (double-buffered)
               + 2 * ncp * out_itemsize                      # out (double-buffered)
               + _round_up(c, 128) * 4)                      # f32 accumulator
    tm_auto = max(8, (int(avail // per_row) // 8) * 8)
    if tm is None:
        if n <= 8:
            tm = n
        else:
            # >=2 batch grid steps so both TensorCores get work on v7x.
            tm = min(tm_auto, max(8, _round_up((n + 1) // 2, 8)))
    grid = (pl.cdiv(n, tm), nk)

    # Actual (layout-padded) VMEM need, with margin, capped per generation.
    needed = (2 * tm * c_sub * _round_up(thw, 128) * itemsize
              + 2 * _round_up(tm, 8) * ncp * out_itemsize
              + 2 * _round_up(c, sub_w) * ncp * w_itemsize
              + 2 * 8 * ncp * 4
              + _round_up(tm, 8) * _round_up(c, 128) * 4)
    vmem_limit = int(min(vmem_cap_limit,
                         max(32 * 1024 * 1024, needed + (4 << 20))))

    def kernel(x_ref, w_ref, b_ref, o_ref, acc_ref):
        # x_ref: (TM, C, THW)  w_ref: (C, NCP)  b_ref: (1, NCP)
        # o_ref: (TM, NCP)     acc_ref: (TM, C) f32 scratch
        k = pl.program_id(1)

        @pl.when(k == 0)
        def _init():
            acc_ref[...] = jnp.zeros_like(acc_ref)

        x = x_ref[...]
        if needs_mask:
            pos = jax.lax.broadcasted_iota(jnp.int32, x.shape, 2) + k * thw
            x = jnp.where(pos < hw, x, jnp.zeros((), x.dtype))
        # Accumulating f32 lane-axis reduce; no materialized f32 copy of the block.
        acc_ref[...] += jnp.sum(x, axis=-1, dtype=jnp.float32)

        @pl.when(k == pl.num_programs(1) - 1)
        def _finalize():
            logits = jnp.dot(acc_ref[...], w_ref[...].astype(jnp.float32),
                             preferred_element_type=jnp.float32)
            o_ref[...] = (logits + b_ref[...]).astype(o_ref.dtype)

    out_p = pl.pallas_call(
        kernel,
        out_shape=jax.ShapeDtypeStruct((n, ncp), out_dtype),
        grid=grid,
        in_specs=[
            pl.BlockSpec((tm, c, thw), lambda i, k: (i, 0, k)),
            pl.BlockSpec((c, ncp), lambda i, k: (0, 0)),
            pl.BlockSpec((1, ncp), lambda i, k: (0, 0)),
        ],
        out_specs=pl.BlockSpec((tm, ncp), lambda i, k: (i, 0)),
        scratch_shapes=[pltpu.VMEM((tm, c), jnp.float32)],
        compiler_params=pltpu.CompilerParams(
            dimension_semantics=("parallel", "arbitrary"),
            vmem_limit_bytes=vmem_limit,
        ),
    )(x3, w_p, b_p)

    return out_p[:, :num_classes]


def reference_forward(x_nchw, weight, bias):
    pooled = jnp.mean(x_nchw.astype(jnp.float32), axis=(2, 3))      # (N, C)
    return pooled @ weight.T.astype(jnp.float32) + bias.astype(jnp.float32)


if __name__ == "__main__":
    # Small shapes consistent with the module: features (N, C, H, W), fc: C -> classes.
    N, C, H, W = 2, 32, 8, 8
    NUM_CLASSES = 10

    key = jax.random.PRNGKey(0)
    kx, kw, kb = jax.random.split(key, 3)

    x = jax.random.normal(kx, (N, C, H, W), dtype=jnp.float32)
    weight = jax.random.normal(kw, (NUM_CLASSES, C), dtype=jnp.float32) * (1.0 / (C ** 0.5))
    bias = jax.random.normal(kb, (NUM_CLASSES,), dtype=jnp.float32) * 0.01

    out = jax.block_until_ready(resnet_classifier_forward(x, weight, bias))
    ref = reference_forward(x, weight, bias)

    assert out.shape == (N, NUM_CLASSES)
    assert jnp.allclose(out.astype(jnp.float32), ref, atol=1e-3, rtol=1e-4), \
        "mismatch vs reference"

    print("KERNEL_OK")
</pallas_src>

<mosaic_0001>
module attributes {stable_mosaic.version = 11 : i64} {
  func.func @kernel(%arg0: i32, %arg1: i32, %arg2: memref<2x32x64xf32, #tpu.memory_space<vmem>>, %arg3: memref<32x128xf32, #tpu.memory_space<vmem>>, %arg4: memref<1x128xf32, #tpu.memory_space<vmem>>, %arg5: memref<2x128xf32, #tpu.memory_space<vmem>>, %arg6: memref<2x32xf32, #tpu.memory_space<vmem>>) attributes {dimension_semantics = [#tpu.dimension_semantics<parallel>, #tpu.dimension_semantics<arbitrary>], iteration_bounds = array<i64: 1, 1>, scalar_prefetch = 0 : i64, scratch_operands = 1 : i64, tpu.core_type = #tpu.core_type<tc>, window_params = [{transform_indices = @transform_0, window_bounds = array<i64: 2, 32, 64>}, {pipeline_mode = #tpu.pipeline_mode<synchronous>, transform_indices = @transform_1, window_bounds = array<i64: 32, 128>}, {pipeline_mode = #tpu.pipeline_mode<synchronous>, transform_indices = @transform_2, window_bounds = array<i64: 1, 128>}, {transform_indices = @transform_3, window_bounds = array<i64: 2, 128>}]} {
    %c0_i32 = arith.constant 0 : i32
    %0 = arith.cmpi eq, %arg1, %c0_i32 : i32
    %1 = arith.extui %0 : i1 to i32
    %c0_i32_0 = arith.constant 0 : i32
    %2 = arith.cmpi ne, %1, %c0_i32_0 : i32
    scf.if %2 {
      %cst_9 = arith.constant 0.000000e+00 : f32
      %11 = vector.broadcast %cst_9 : f32 to vector<2x32xf32>
      %c0_10 = arith.constant 0 : index
      %c0_11 = arith.constant 0 : index
      %12 = vector.load %arg6[%c0_10, %c0_11] : memref<2x32xf32, #tpu.memory_space<vmem>>, vector<2x32xf32>
      tpu.vector_store %arg6[%c0_10, %c0_11], %11 {strides = array<i32>} : memref<2x32xf32, #tpu.memory_space<vmem>>, vector<2x32xf32>,
    } else {
    }
    %c0 = arith.constant 0 : index
    %c0_1 = arith.constant 0 : index
    %c0_2 = arith.constant 0 : index
    %3 = vector.load %arg2[%c0, %c0_1, %c0_2] : memref<2x32x64xf32, #tpu.memory_space<vmem>>, vector<2x32x64xf32>
    %c0_3 = arith.constant 0 : index
    %c0_4 = arith.constant 0 : index
    %4 = vector.load %arg6[%c0_3, %c0_4] : memref<2x32xf32, #tpu.memory_space<vmem>>, vector<2x32xf32>
    %cst = arith.constant dense<0.000000e+00> : vector<2x32xf32>
    %5 = vector.multi_reduction <add>, %3, %cst [2] : vector<2x32x64xf32> to vector<2x32xf32>
    %6 = arith.addf %4, %5 : vector<2x32xf32>
    %c0_5 = arith.constant 0 : index
    %c0_6 = arith.constant 0 : index
    %7 = vector.load %arg6[%c0_5, %c0_6] : memref<2x32xf32, #tpu.memory_space<vmem>>, vector<2x32xf32>
    tpu.vector_store %arg6[%c0_5, %c0_6], %6 {strides = array<i32>} : memref<2x32xf32, #tpu.memory_space<vmem>>, vector<2x32xf32>,
    %c0_i32_7 = arith.constant 0 : i32
    %8 = arith.cmpi eq, %arg1, %c0_i32_7 : i32
    %9 = arith.extui %8 : i1 to i32
    %c0_i32_8 = arith.constant 0 : i32
    %10 = arith.cmpi ne, %9, %c0_i32_8 : i32
    scf.if %10 {
      %c0_9 = arith.constant 0 : index
      %c0_10 = arith.constant 0 : index
      %11 = vector.load %arg6[%c0_9, %c0_10] : memref<2x32xf32, #tpu.memory_space<vmem>>, vector<2x32xf32>
      %c0_11 = arith.constant 0 : index
      %c0_12 = arith.constant 0 : index
      %12 = vector.load %arg3[%c0_11, %c0_12] : memref<32x128xf32, #tpu.memory_space<vmem>>, vector<32x128xf32>
      %cst_13 = arith.constant dense<0.000000e+00> : vector<2x128xf32>
      %13 = tpu.matmul %11, %12, %cst_13 {dimension_numbers = #tpu.dot_dimension_numbers<[1], [0], [0], [1], [0, 0, 1, 1], [], []>} : vector<2x32xf32>, vector<32x128xf32>, vector<2x128xf32> -> vector<2x128xf32>
      %c0_14 = arith.constant 0 : index
      %c0_15 = arith.constant 0 : index
      %14 = vector.load %arg4[%c0_14, %c0_15] : memref<1x128xf32, #tpu.memory_space<vmem>>, vector<1x128xf32>
      %15 = vector.broadcast %14 : vector<1x128xf32> to vector<2x128xf32>
      %16 = arith.addf %13, %15 : vector<2x128xf32>
      %c0_16 = arith.constant 0 : index
      %c0_17 = arith.constant 0 : index
      %17 = vector.load %arg5[%c0_16, %c0_17] : memref<2x128xf32, #tpu.memory_space<vmem>>, vector<2x128xf32>
      tpu.vector_store %arg5[%c0_16, %c0_17], %16 {strides = array<i32>} : memref<2x128xf32, #tpu.memory_space<vmem>>, vector<2x128xf32>,
    } else {
    }
    return
  }
  func.func @transform_0(%arg0: i32, %arg1: i32) -> (i32, i32, i32) {
    %c0_i32 = arith.constant 0 : i32
    %c0_i32_0 = arith.constant 0 : i32
    return %arg0, %c0_i32, %arg1 : i32, i32, i32
  }
  func.func @transform_1(%arg0: i32, %arg1: i32) -> (i32, i32) {
    %c0_i32 = arith.constant 0 : i32
    %c0_i32_0 = arith.constant 0 : i32
    %c0_i32_1 = arith.constant 0 : i32
    return %c0_i32, %c0_i32_0 : i32, i32
  }
  func.func @transform_2(%arg0: i32, %arg1: i32) -> (i32, i32) {
    %c0_i32 = arith.constant 0 : i32
    %c0_i32_0 = arith.constant 0 : i32
    %c0_i32_1 = arith.constant 0 : i32
    return %c0_i32, %c0_i32_0 : i32, i32
  }
  func.func @transform_3(%arg0: i32, %arg1: i32) -> (i32, i32) {
    %c0_i32 = arith.constant 0 : i32
    %c0_i32_0 = arith.constant 0 : i32
    return %arg0, %c0_i32 : i32, i32
  }
}

</mosaic_0001>

<bundles_post_ra>
// kernel: tpu_custom_call.1
= control target key start
LH: loop header
LB: loop body
LE: loop exit
PB: predicated region body
PF: predicated region fallthrough
CT: control target
= control target key end

     0   :  { %8 = vsyncpa [#allocation4], 0  ;;  %s312_s0 = inlined_call_operand.hbm [shape: f32[2,32,64], index: 0, kind: input, shape index: {}]   ;;  %s313_s1 = inlined_call_operand.hbm [shape: f32[32,128], index: 1, kind: input, shape index: {}]   ;;  %s314_s2 = inlined_call_operand.vmem [shape: f32[1,128], index: 2, kind: input, shape index: {}]   ;;  %s315_s3 = inlined_call_operand.hbm [shape: f32[2,128], index: 3, kind: output, shape index: {}]  }
   0x1   :  { %9 = vsyncpa [#allocation7], 0 }
   0x2   :  { %10 = vsyncpa [#allocation5], 0  ;;  %s15_s14 = sshll.u32 %s312_s0, 4  ;;  %s264_s15 = smov [#allocation3]   ;;  %s16_s14 = int_to_ptr.hbm [resolvable:$true] %s15_s14 }
   0x3   :  { %s17_s16 = sshll.u32 %s264_s15, 4  ;;  %s28_s19 = sshll.u32 %s313_s1, 4  ;;  %s18_s16 = int_to_ptr.vmem [resolvable:$true] %s17_s16  ;;  %s29_s19 = int_to_ptr.hbm [resolvable:$true] %s28_s19 }
   0x4   :  { %s265_s20 = smov 128   ;;  %s266_s21 = smov 8  }
   0x5   :  { %23 = dma.hbm_to_vmem [thread:$0]  %s16_s14, 1024, %s18_s16, [#allocation4], %s265_s20, %s265_s20, %s266_s21  }
   0x6   :  { %s267_s22 = smov [#allocation6]  }
   0x7   :  { %s30_s23 = sshll.u32 %s267_s22, 4  ;;  %s31_s23 = int_to_ptr.vmem [resolvable:$true] %s30_s23 }
   0x8   :  { %36 = dma.hbm_to_vmem [thread:$0]  %s29_s19, 512, %s31_s23, [#allocation7], %s265_s20, %s265_s20, %s266_s21  }
   0x9   :  { %258 = dma.done.wait [#allocation4], 1024  }
   0xa   :  { %259 = vsyncadd [#allocation4], 4294966272 }
   0xb   :  { %260 = dma.done.wait [#allocation7], 512  }
   0xc   :  { %261 = vsyncadd [#allocation7], 4294966784  ;;  %vm62_vm0 = vcmask 523264   ;;  %v57_v0 = vld [vmem:[#allocation3 + $0x20] sm:$0xff]  ;;  %v55_v2 = vld [vmem:[#allocation3 + $0x10] sm:$0xff]  ;;  %vm51_vm1 = vcmask 254976   ;;  %v95_v23 = vlaneseq }
   0xd   :  { %v53_v1 = vld [vmem:[#allocation3] sm:$0xff]  ;;  %v75_v3 = vsel %vm62_vm0, %v57_v0, 0.0  ;;  %v69_v5 = vsel %vm62_vm0, %v55_v2, 0.0  ;;  %v58_v6 = vld [vmem:[#allocation3 + $0x28] sm:$0xff]  ;;  %v59_v8 = vld [vmem:[#allocation3 + $0x30] sm:$0xff]  ;;  %v268_v16 = vmov 0.0  }
   0xe   :  { %v63_v4 = vsel %vm62_vm0, %v53_v1, 0.0  ;;  %76 = vadd.xlane.f32.xlu1 %v75_v3  ;;  %70 = vadd.xlane.f32.xlu2 %v69_v5  ;;  %v54_v7 = vld [vmem:[#allocation3 + $0x8] sm:$0xff]  ;;  %v78_v9 = vsel %vm62_vm0, %v58_v6, 0.0  ;;  %v81_v11 = vsel %vm62_vm0, %v59_v8, 0.0  ;;  %v60_v12 = vld [vmem:[#allocation3 + $0x38] sm:$0xff]  ;;  %v129_v18 = vld [vmem:[#allocation6 + $0x10] sm:$0xff] }
   0xf   :  { %64 = vadd.xlane.f32.xlu0 %v63_v4  ;;  %v66_v10 = vsel %vm62_vm0, %v54_v7, 0.0  ;;  %v56_v13 = vld [vmem:[#allocation3 + $0x18] sm:$0xff]  ;;  %v84_v14 = vsel %vm62_vm0, %v60_v12, 0.0  ;;  %52 = vst.msk [vmem:[#allocation2] sm:$0x3] %vm51_vm1, %v268_v16  ;;  %v128_v19 = vld [vmem:[#allocation6 + $0x8] sm:$0xff] }
  0x10   :  { %v72_v15 = vsel %vm62_vm0, %v56_v13, 0.0  ;;  %v130_v17 = vld [vmem:[#allocation6 + $0x18] sm:$0xff]  ;;  %v127_v20 = vld [vmem:[#allocation6] sm:$0xff]  ;;  %v96_v25 = vand.u32 127, %v95_v23  ;;  %vm100_vm2 = vcmask 130112   ;;  %vm104_vm3 = vcmask 195712  }
  0x11   :  { %151 = vmatpush.msra.mxu0 %v130_v17  ;;  %vm108_vm4 = vcmask 261312   ;;  %vm117_vm5 = vcmask 1041409   ;;  %vm135_vm6 = vcmask 261120   ;;  %v185_v52 = vld [vmem:[%s314_s2] ss:$0 sm:$0xff]  ;;  %s269_s24 = smov [#allocation8]  }
  0x12   :  { %v98_v26 = vadd.s32 4294967288, %v96_v25  ;;  %v102_v32 = vadd.s32 4294967280, %v96_v25  ;;  %v106_v35 = vadd.s32 4294967272, %v96_v25  ;;  %s165_s25 = sshll.u32 %s269_s24, 4  ;;  %s167_s28 = sshll.u32 %s315_s3, 4  ;;  %s166_s25 = int_to_ptr.vmem [resolvable:$true] %s165_s25  ;;  %s168_s28 = int_to_ptr.hbm [resolvable:$true] %s167_s28 }
  0x13   :  { %152 = vmatpush.msra.mxu0 %v129_v18 }
  0x15   :  { %153 = vmatpush.msra.mxu0 %v128_v19 }
  0x16   :  { %79 = vadd.xlane.f32.xlu1 %v78_v9  ;;  %82 = vadd.xlane.f32.xlu2 %v81_v11  ;;  %v61_v46 = vld [vmem:[#allocation2] sm:$0x3] }
  0x17   :  { %67 = vadd.xlane.f32.xlu0 %v66_v10  ;;  %154 = vmatpush.msra.mxu0 %v127_v20 }
  0x1e   :  { %85 = vadd.xlane.f32.xlu1 %v84_v14 }
  0x1f   :  { %73 = vadd.xlane.f32.xlu0 %v72_v15 }
  0x81   :  { %v77_v21 = vpop.xlane.xlu1 %76  ;;  %v71_v24 = vpop.xlane.xlu2 %70 }
  0x82   :  { %v65_v22 = vpop.xlane.xlu0 %64  ;;  %v110_v33 = vperm.slane %v77_v21, %v96_v25  ;;  %v103_v39 = vperm.slane %v71_v24, %v102_v32 }
  0x83   :  { %v97_v34 = vperm.slane %v65_v22, %v96_v25 }
  0x89   :  { %v80_v27 = vpop.xlane.xlu1 %79  ;;  %v83_v31 = vpop.xlane.xlu2 %82 }
  0x8a   :  { %v68_v28 = vpop.xlane.xlu0 %67  ;;  %v111_v29 = vperm.slane %v80_v27, %v98_v26  ;;  %v113_v36 = vperm.slane %v83_v31, %v102_v32 }
  0x8b   :  { %v99_v30 = vperm.slane %v68_v28, %v98_v26 }
  0x8c   :  { %v112_v37 = vsel %vm100_vm2, %v111_v29, %v110_v33 }
  0x8d   :  { %v101_v38 = vsel %vm100_vm2, %v99_v30, %v97_v34  ;;  %v114_v44 = vsel %vm104_vm3, %v113_v36, %v112_v37 }
  0x8e   :  { %v105_v45 = vsel %vm104_vm3, %v103_v39, %v101_v38 }
  0x91   :  { %v86_v40 = vpop.xlane.xlu1 %85 }
  0x92   :  { %v74_v41 = vpop.xlane.xlu0 %73  ;;  %v115_v42 = vperm.slane %v86_v40, %v106_v35 }
  0x93   :  { %v107_v43 = vperm.slane %v74_v41, %v106_v35 }
  0x94   :  { %v116_v47 = vsel %vm108_vm4, %v115_v42, %v114_v44 }
  0x95   :  { %v109_v48 = vsel %vm108_vm4, %v107_v43, %v105_v45 }
  0x96   :  { %v118_v49 = vsel %vm117_vm5, %v116_v47, %v109_v48 }
  0x97   :  { %v120_v50 = vadd.f32 %v118_v49, %v61_v46 }
  0x99   :  { %122 = vst.msk [vmem:[#allocation2] sm:$0x3] %vm51_vm1, %v120_v50 }
  0xa0   :  { %v126_v51 = vld [vmem:[#allocation2] sm:$0x3] }
  0xa1   :  { %178 = vmatmul.msk.f32.vlgmr.msra.gmra.mxu0 %vm135_vm6, %v126_v51 }
 0x11e   :  { %v156_v53 = vpop.f32.mrf.mxu0 }
 0x11f   :  { %v157_v54 = vadd.f32 %v185_v52, %v156_v53 }
 0x121   :  { %159 = vst [vmem:[#allocation8] sm:$0x3] %v157_v54 }
 0x122   :  { %170 = dma.vmem_to_hbm [thread:$0]  %s166_s25, 32, %s168_s28, [#allocation5]  }
 0x123   :  { %262 = dma.done.wait [#allocation5], 32  }
 0x124   :  { %263 = vsyncadd [#allocation5], 4294967264 }
 0x125   :  { %175 = vsyncpa [#allocation4], 1 }
 0x126   :  { %176 = vsyncpa [#allocation7], 1 }
 0x127   :  { %177 = vsyncpa [#allocation5], 1 }

</bundles_post_ra>
